<compile_context>
chip_gen: v7x
topology: tpu7x:2x2x1
jax: 0.10.0
libtpu: 0.0.40
codegen_flags: <defaults>
</compile_context>

<pallas_src>
import jax
import jax.numpy as jnp
import numpy as np
from jax.experimental import pallas as pl
from jax.experimental.pallas import tpu as pltpu


def svm_kernel(p1_ref, p2_ref, w1a_ref, w1b_ref, w2_ref, b_ref, out_ref):
    b = b_ref[...]                       # (2, 10) packed biases
    b1 = b[0:1, :]                       # (1, 10)
    b2 = b[1:2, 0:2]                     # (1, 2)

    # linear1 (concat folded into two MXU dots) + bias, then ReLU
    h = (jnp.dot(p1_ref[...], w1a_ref[...], preferred_element_type=jnp.float32)
         + jnp.dot(p2_ref[...], w1b_ref[...], preferred_element_type=jnp.float32)
         + b1)
    h = jnp.maximum(h, 0.0)

    # linear2 -> (TB, 2) logits
    logits = jnp.dot(h, w2_ref[...], preferred_element_type=jnp.float32) + b2

    # softmax over 2 classes via the exact sigmoid identity (no XLU reduce)
    d = logits[:, 0:1] - logits[:, 1:2]
    p0 = 1.0 / (1.0 + jnp.exp(-d))

    # direct slice stores (no lane-concat of two 1-wide columns)
    out_ref[:, 0:1] = p0.astype(out_ref.dtype)
    out_ref[:, 1:2] = (1.0 - p0).astype(out_ref.dtype)


def _round_up(x, m):
    return ((x + m - 1) // m) * m


def svm_forward(pro1_emd, pro2_emd, w1, b1, w2, b2, *, block_b=4096):
    """w1: (10, n), b1: (1, 10), w2: (2, 10), b2: (1, 2) — PyTorch Linear layout."""
    B, D = pro1_emd.shape
    n = w1.shape[1]
    assert n == 2 * D, "linear1 expects concat([pro1_emd, pro2_emd]) features"

    # One-time wrapper-side layout work (kept out of the kernel).
    w1a = jnp.transpose(w1[:, :D])                 # (D, 10)
    w1b = jnp.transpose(w1[:, D:])                 # (D, 10)
    w2t = jnp.transpose(w2)                        # (10, 2)
    bias = jnp.zeros((2, 10), jnp.float32)
    bias = bias.at[0, :].set(b1.reshape(-1))
    bias = bias.at[1, :2].set(b2.reshape(-1))

    # Tile selection:
    #  * small B: one full block.
    #  * large B: <= block_b rows per step, but ensure the grid has at least
    #    two steps (v7x megacore sharding) and tb is a multiple of 8 sublanes.
    if B <= block_b:
        tb = B
    else:
        tb = min(block_b, _round_up(pl.cdiv(B, 2), 8))
        tb = _round_up(tb, 8)
    grid = (pl.cdiv(B, tb),)

    # VMEM budget: each (tb, 16) / (tb, 2) f32 block pads to 128 lanes
    # -> tb*512 B per buffer. 2 inputs + 1 output, double-buffered, + headroom.
    per_buf = tb * 128 * 4
    footprint = 2 * (2 * per_buf) + 2 * per_buf
    vmem_limit = int(min(footprint + (8 << 20), 48 << 20))

    const = lambda i: (0, 0)   # weights/bias: same block every step -> stay resident
    return pl.pallas_call(
        svm_kernel,
        out_shape=jax.ShapeDtypeStruct((B, 2), jnp.float32),
        grid=grid,
        in_specs=[
            pl.BlockSpec((tb, D), lambda i: (i, 0)),   # pro1 tile
            pl.BlockSpec((tb, D), lambda i: (i, 0)),   # pro2 tile
            pl.BlockSpec((D, 10), const),              # W1a (resident)
            pl.BlockSpec((D, 10), const),              # W1b (resident)
            pl.BlockSpec((10, 2), const),              # W2  (resident)
            pl.BlockSpec((2, 10), const),              # packed biases (resident)
        ],
        out_specs=pl.BlockSpec((tb, 2), lambda i: (i, 0)),
        compiler_params=pltpu.CompilerParams(
            dimension_semantics=("parallel",),
            vmem_limit_bytes=vmem_limit),
    )(pro1_emd, pro2_emd, w1a, w1b, w2t, bias)


def init_params(n, key):
    """Deterministic PyTorch-Linear-style init: U(-1/sqrt(fan_in), 1/sqrt(fan_in))."""
    k1, k2, k3, k4 = jax.random.split(key, 4)
    lim1 = 1.0 / np.sqrt(n)
    lim2 = 1.0 / np.sqrt(10)
    w1 = jax.random.uniform(k1, (10, n), jnp.float32, -lim1, lim1)   # (out, in)
    b1 = jax.random.uniform(k2, (1, 10), jnp.float32, -lim1, lim1)
    w2 = jax.random.uniform(k3, (2, 10), jnp.float32, -lim2, lim2)
    b2 = jax.random.uniform(k4, (1, 2), jnp.float32, -lim2, lim2)
    return w1, b1, w2, b2


def _reference(pro1, pro2, w1, b1, w2, b2):
    x = jnp.concatenate([pro1, pro2], axis=-1)
    h = jnp.maximum(x @ w1.T + b1, 0.0)
    logits = h @ w2.T + b2
    return jax.nn.softmax(logits, axis=1)


if __name__ == "__main__":
    key = jax.random.PRNGKey(0)
    kx1, kx2, kp, kx3, kx4 = jax.random.split(key, 5)

    B, D = 8, 16          # each embedding (B, 16) -> concatenated n = 32
    n = 2 * D

    pro1 = jax.random.normal(kx1, (B, D), jnp.float32)
    pro2 = jax.random.normal(kx2, (B, D), jnp.float32)
    w1, b1, w2, b2 = init_params(n, kp)

    out = svm_forward(pro1, pro2, w1, b1, w2, b2)
    out = jax.block_until_ready(out)
    ref = _reference(pro1, pro2, w1, b1, w2, b2)
    np.testing.assert_allclose(np.asarray(out), np.asarray(ref), rtol=1e-5, atol=1e-5)

    # Exercise the multi-step (tiled + ragged last tile) path as well.
    B2 = 1000
    pro1b = jax.random.normal(kx3, (B2, D), jnp.float32)
    pro2b = jax.random.normal(kx4, (B2, D), jnp.float32)
    out2 = svm_forward(pro1b, pro2b, w1, b1, w2, b2, block_b=256)
    out2 = jax.block_until_ready(out2)
    ref2 = _reference(pro1b, pro2b, w1, b1, w2, b2)
    np.testing.assert_allclose(np.asarray(out2), np.asarray(ref2), rtol=1e-5, atol=1e-5)

    print("KERNEL_OK")
</pallas_src>

<mosaic_0001>
module attributes {stable_mosaic.version = 11 : i64} {
  func.func @svm_kernel(%arg0: i32, %arg1: memref<8x16xf32, #tpu.memory_space<vmem>>, %arg2: memref<8x16xf32, #tpu.memory_space<vmem>>, %arg3: memref<16x10xf32, #tpu.memory_space<vmem>>, %arg4: memref<16x10xf32, #tpu.memory_space<vmem>>, %arg5: memref<10x2xf32, #tpu.memory_space<vmem>>, %arg6: memref<2x10xf32, #tpu.memory_space<vmem>>, %arg7: memref<8x2xf32, #tpu.memory_space<vmem>>) attributes {dimension_semantics = [#tpu.dimension_semantics<parallel>], iteration_bounds = array<i64: 1>, scalar_prefetch = 0 : i64, scratch_operands = 0 : i64, tpu.core_type = #tpu.core_type<tc>, window_params = [{transform_indices = @transform_0, window_bounds = array<i64: 8, 16>}, {transform_indices = @transform_1, window_bounds = array<i64: 8, 16>}, {pipeline_mode = #tpu.pipeline_mode<synchronous>, transform_indices = @transform_2, window_bounds = array<i64: 16, 10>}, {pipeline_mode = #tpu.pipeline_mode<synchronous>, transform_indices = @transform_3, window_bounds = array<i64: 16, 10>}, {pipeline_mode = #tpu.pipeline_mode<synchronous>, transform_indices = @transform_4, window_bounds = array<i64: 10, 2>}, {pipeline_mode = #tpu.pipeline_mode<synchronous>, transform_indices = @transform_5, window_bounds = array<i64: 2, 10>}, {transform_indices = @transform_6, window_bounds = array<i64: 8, 2>}]} {
    %c0 = arith.constant 0 : index
    %c0_0 = arith.constant 0 : index
    %0 = vector.load %arg6[%c0, %c0_0] : memref<2x10xf32, #tpu.memory_space<vmem>>, vector<2x10xf32>
    %1 = vector.extract_strided_slice %0 {offsets = [0, 0], sizes = [1, 10], strides = [1, 1]} : vector<2x10xf32> to vector<1x10xf32>
    %2 = vector.extract_strided_slice %0 {offsets = [1, 0], sizes = [1, 2], strides = [1, 1]} : vector<2x10xf32> to vector<1x2xf32>
    %c0_1 = arith.constant 0 : index
    %c0_2 = arith.constant 0 : index
    %3 = vector.load %arg1[%c0_1, %c0_2] : memref<8x16xf32, #tpu.memory_space<vmem>>, vector<8x16xf32>
    %c0_3 = arith.constant 0 : index
    %c0_4 = arith.constant 0 : index
    %4 = vector.load %arg3[%c0_3, %c0_4] : memref<16x10xf32, #tpu.memory_space<vmem>>, vector<16x10xf32>
    %cst = arith.constant dense<0.000000e+00> : vector<8x10xf32>
    %5 = tpu.matmul %3, %4, %cst {dimension_numbers = #tpu.dot_dimension_numbers<[1], [0], [0], [1], [0, 0, 1, 1], [], []>} : vector<8x16xf32>, vector<16x10xf32>, vector<8x10xf32> -> vector<8x10xf32>
    %c0_5 = arith.constant 0 : index
    %c0_6 = arith.constant 0 : index
    %6 = vector.load %arg2[%c0_5, %c0_6] : memref<8x16xf32, #tpu.memory_space<vmem>>, vector<8x16xf32>
    %c0_7 = arith.constant 0 : index
    %c0_8 = arith.constant 0 : index
    %7 = vector.load %arg4[%c0_7, %c0_8] : memref<16x10xf32, #tpu.memory_space<vmem>>, vector<16x10xf32>
    %cst_9 = arith.constant dense<0.000000e+00> : vector<8x10xf32>
    %8 = tpu.matmul %6, %7, %cst_9 {dimension_numbers = #tpu.dot_dimension_numbers<[1], [0], [0], [1], [0, 0, 1, 1], [], []>} : vector<8x16xf32>, vector<16x10xf32>, vector<8x10xf32> -> vector<8x10xf32>
    %9 = arith.addf %5, %8 : vector<8x10xf32>
    %10 = vector.broadcast %1 : vector<1x10xf32> to vector<8x10xf32>
    %11 = arith.addf %9, %10 : vector<8x10xf32>
    %cst_10 = arith.constant 0.000000e+00 : f32
    %12 = vector.broadcast %cst_10 : f32 to vector<8x10xf32>
    %13 = arith.maximumf %11, %12 : vector<8x10xf32>
    %c0_11 = arith.constant 0 : index
    %c0_12 = arith.constant 0 : index
    %14 = vector.load %arg5[%c0_11, %c0_12] : memref<10x2xf32, #tpu.memory_space<vmem>>, vector<10x2xf32>
    %cst_13 = arith.constant dense<0.000000e+00> : vector<8x2xf32>
    %15 = tpu.matmul %13, %14, %cst_13 {dimension_numbers = #tpu.dot_dimension_numbers<[1], [0], [0], [1], [0, 0, 1, 1], [], []>} : vector<8x10xf32>, vector<10x2xf32>, vector<8x2xf32> -> vector<8x2xf32>
    %16 = vector.broadcast %2 : vector<1x2xf32> to vector<8x2xf32>
    %17 = arith.addf %15, %16 : vector<8x2xf32>
    %18 = vector.extract_strided_slice %17 {offsets = [0, 0], sizes = [8, 1], strides = [1, 1]} : vector<8x2xf32> to vector<8x1xf32>
    %19 = vector.extract_strided_slice %17 {offsets = [0, 1], sizes = [8, 1], strides = [1, 1]} : vector<8x2xf32> to vector<8x1xf32>
    %20 = arith.subf %18, %19 : vector<8x1xf32>
    %cst_14 = arith.constant 0.000000e+00 : f32
    %21 = vector.broadcast %cst_14 : f32 to vector<8x1xf32>
    %22 = arith.subf %21, %20 : vector<8x1xf32>
    %23 = math.exp %22 : vector<8x1xf32>
    %cst_15 = arith.constant 1.000000e+00 : f32
    %24 = vector.broadcast %cst_15 : f32 to vector<8x1xf32>
    %25 = arith.addf %24, %23 : vector<8x1xf32>
    %cst_16 = arith.constant 1.000000e+00 : f32
    %26 = vector.broadcast %cst_16 : f32 to vector<8x1xf32>
    %27 = arith.divf %26, %25 : vector<8x1xf32>
    %c0_17 = arith.constant 0 : index
    %c0_18 = arith.constant 0 : index
    %28 = vector.load %arg7[%c0_17, %c0_18] : memref<8x2xf32, #tpu.memory_space<vmem>>, vector<8x1xf32>
    tpu.vector_store %arg7[%c0_17, %c0_18], %27 {strides = array<i32>} : memref<8x2xf32, #tpu.memory_space<vmem>>, vector<8x1xf32>,
    %cst_19 = arith.constant 1.000000e+00 : f32
    %29 = vector.broadcast %cst_19 : f32 to vector<8x1xf32>
    %30 = arith.subf %29, %27 : vector<8x1xf32>
    %c0_20 = arith.constant 0 : index
    %c1 = arith.constant 1 : index
    %31 = vector.load %arg7[%c0_20, %c1] : memref<8x2xf32, #tpu.memory_space<vmem>>, vector<8x1xf32>
    tpu.vector_store %arg7[%c0_20, %c1], %30 {strides = array<i32>} : memref<8x2xf32, #tpu.memory_space<vmem>>, vector<8x1xf32>,
    return
  }
  func.func @transform_0(%arg0: i32) -> (i32, i32) {
    %c0_i32 = arith.constant 0 : i32
    %c0_i32_0 = arith.constant 0 : i32
    return %arg0, %c0_i32 : i32, i32
  }
  func.func @transform_1(%arg0: i32) -> (i32, i32) {
    %c0_i32 = arith.constant 0 : i32
    %c0_i32_0 = arith.constant 0 : i32
    return %arg0, %c0_i32 : i32, i32
  }
  func.func @transform_2(%arg0: i32) -> (i32, i32) {
    %c0_i32 = arith.constant 0 : i32
    %c0_i32_0 = arith.constant 0 : i32
    %c0_i32_1 = arith.constant 0 : i32
    return %c0_i32, %c0_i32_0 : i32, i32
  }
  func.func @transform_3(%arg0: i32) -> (i32, i32) {
    %c0_i32 = arith.constant 0 : i32
    %c0_i32_0 = arith.constant 0 : i32
    %c0_i32_1 = arith.constant 0 : i32
    return %c0_i32, %c0_i32_0 : i32, i32
  }
  func.func @transform_4(%arg0: i32) -> (i32, i32) {
    %c0_i32 = arith.constant 0 : i32
    %c0_i32_0 = arith.constant 0 : i32
    %c0_i32_1 = arith.constant 0 : i32
    return %c0_i32, %c0_i32_0 : i32, i32
  }
  func.func @transform_5(%arg0: i32) -> (i32, i32) {
    %c0_i32 = arith.constant 0 : i32
    %c0_i32_0 = arith.constant 0 : i32
    %c0_i32_1 = arith.constant 0 : i32
    return %c0_i32, %c0_i32_0 : i32, i32
  }
  func.func @transform_6(%arg0: i32) -> (i32, i32) {
    %c0_i32 = arith.constant 0 : i32
    %c0_i32_0 = arith.constant 0 : i32
    return %arg0, %c0_i32 : i32, i32
  }
}

</mosaic_0001>

<bundles_post_ra>
// kernel: tpu_custom_call.1
= control target key start
LH: loop header
LB: loop body
LE: loop exit
PB: predicated region body
PF: predicated region fallthrough
CT: control target
= control target key end

     0   :  { %11 = vsyncpa [#allocation3], 0  ;;  %s528_s0 = inlined_call_operand.vmem [shape: f32[8,16], index: 0, kind: input, shape index: {}]   ;;  %s529_s1 = inlined_call_operand.hbm [shape: f32[8,16], index: 1, kind: input, shape index: {}]   ;;  %s530_s2 = inlined_call_operand.vmem [shape: f32[16,10], index: 2, kind: input, shape index: {}]   ;;  %s531_s3 = inlined_call_operand.hbm [shape: f32[16,10], index: 3, kind: input, shape index: {}]   ;;  %s532_s4 = inlined_call_operand.vmem [shape: f32[10,2], index: 4, kind: input, shape index: {}]   ;;  %s533_s5 = inlined_call_operand.vmem [shape: f32[2,10], index: 5, kind: input, shape index: {}]   ;;  %s534_s6 = inlined_call_operand.vmem [shape: f32[8,2], index: 6, kind: output, shape index: {}]  }
   0x1   :  { %12 = vsyncpa [#allocation5], 0  ;;  %s425_s21 = smov [#allocation2]   ;;  %s426_s23 = smov [#allocation4]  }
   0x2   :  { %s21_s22 = sshll.u32 %s425_s21, 4  ;;  %s32_s24 = sshll.u32 %s426_s23, 4  ;;  %s22_s22 = int_to_ptr.vmem [resolvable:$true] %s21_s22  ;;  %s470_s24 = int_to_ptr.vmem [resolvable:$true] %s32_s24 }
   0x3   :  { %s377_s27 = scalar_lea.hbm %s529_s1, 128 }
   0x4   :  { %p378_p0 = scmp.ne.s32.totalorder %s529_s1, %s377_s27  ;;  %p381_p1 = scmp.lt.u32.totalorder %s377_s27, %s529_s1 }
   0x6   :  { %p383_p2 = pnand %p381_p1, %p378_p0 }
   0x8   :  { %386 = shalt.err (!%p383_p2)
}
   0x9   :  { %s387_s8 = scalar_lea.vmem %s22_s22, 128  ;;  %p392_p4 = scmp.lt.s32.totalorder %s22_s22, %s22_s22 }
   0xa   :  { %p388_p3 = scmp.ne.s32.totalorder %s22_s22, %s387_s8  ;;  %p393_p5 = scmp.lt.s32.totalorder %s387_s8, %s387_s8 }
   0xc   :  { %p394_p6 = por %p393_p5, %p392_p4 }
   0xe   :  { %p395_p7 = pnand %p394_p6, %p388_p3 }
  0x10   :  { %398 = shalt.err (!%p395_p7)
}
  0x11   :  { %24 = dma.hbm_to_vmem [thread:$0]  %s529_s1, 128, %s22_s22, [#allocation3]  }
  0x12   :  { %s399_s13 = scalar_lea.hbm %s531_s3, 256 }
  0x13   :  { %p400_p8 = scmp.ne.s32.totalorder %s531_s3, %s399_s13  ;;  %p403_p9 = scmp.lt.u32.totalorder %s399_s13, %s531_s3 }
  0x15   :  { %p405_p10 = pnand %p403_p9, %p400_p8 }
  0x17   :  { %408 = shalt.err (!%p405_p10)
}
  0x18   :  { %s409_s18 = scalar_lea.vmem %s470_s24, 256  ;;  %p414_p12 = scmp.lt.s32.totalorder %s470_s24, %s470_s24 }
  0x19   :  { %p410_p11 = scmp.ne.s32.totalorder %s470_s24, %s409_s18  ;;  %p415_p13 = scmp.lt.s32.totalorder %s409_s18, %s409_s18 }
  0x1b   :  { %p416_p0 = por %p415_p13, %p414_p12 }
  0x1d   :  { %p417_p1 = pnand %p416_p0, %p410_p11 }
  0x1f   :  { %420 = shalt.err (!%p417_p1)
}
  0x20   :  { %s427_s1 = smov 128   ;;  %s428_s19 = smov 8  }
  0x21   :  { %38 = dma.hbm_to_vmem [thread:$0]  %s531_s3, 256, %s470_s24, [#allocation5], %s427_s1, %s427_s1, %s428_s19  }
  0x22   :  { %421 = dma.done.wait [#allocation3], 128  }
  0x23   :  { %422 = vsyncadd [#allocation3], 4294967168 }
  0x24   :  { %423 = dma.done.wait [#allocation5], 256  }
  0x25   :  { %424 = vsyncadd [#allocation5], 4294967040  ;;  %v429_v0 = vmov 0.0|0.0   ;;  %vm430_vm0 = vmmov 0   ;;  %v431_v1 = vmov 0.0   ;;  %v54_v2 = vld [vmem:[#allocation4] sm:$0xff]  ;;  %v203_v10 = vlaneseq }
  0x26   :  { %353 = vmatprep.subr.bf16.mxu0 %v429_v0  ;;  %356 = vmatprep.subr.bf16.mxu1 %v429_v0  ;;  %v55_v3 = vld [vmem:[#allocation4 + $0x8] sm:$0xff]  ;;  %v51_v4 = vld [vmem:[%s530_s2] sm:$0xff]  ;;  %v52_v6 = vld [vmem:[%s530_s2 + $0x8] sm:$0xff]  ;;  %vm56_vm1 = vcmask 130048   ;;  %vm219_vm2 = vcmask 1041408   ;;  %vm432_vm3 = vmmov 1  }
  0x27   :  { %336 = vmatprep.mubr.msk.f32.mxu0 %vm430_vm0, %v431_v1  ;;  %343 = vmatprep.mubr.msk.f32.mxu1 %vm430_vm0, %v431_v1  ;;  %v354_v5 = vpack.c.bf16 %v55_v3, %v54_v2  ;;  %v357_v7 = vpack.c.bf16 %v52_v6, %v51_v4  ;;  %v53_v8 = vld [vmem:[#allocation2] sm:$0xff]  ;;  %v210_v12 = vld [vmem:[%s532_s4 + $0x8] sm:$0x3]  ;;  %vm361_vm4 = vmpackc.low %vm219_vm2, %vm432_vm3  ;;  %v204_v14 = vshrl.u32 %v203_v10, 7  ;;  %vm215_vm5 = vcmask 80896   ;;  %s434_s8 = smov 1  }
  0x28   :  { %v50_v9 = vld [vmem:[%s528_s0] sm:$0xff]  ;;  %vm304_vm6 = vcmask 7168   ;;  %vm311_vm7 = vcmask 15368  }
  0x29   :  { %355 = vmatpush3.bf16.msra.mxu0 %v354_v5  ;;  %358 = vmatpush3.bf16.msra.mxu1 %v357_v7  ;;  %v209_v11 = vld [vmem:[%s532_s4] sm:$0xff]  ;;  %v213_v15 = vsub.s32 1, %v204_v14  ;;  %v205_v18 = vsub.s32 0, %v204_v14  ;;  %s433_s4 = smov 127  }
  0x2a   :  { %359 = vmatprep.subr.bf16.mxu0 %v429_v0  ;;  %v360_v13 = vpack.c.bf16 %v210_v12, %v209_v11  ;;  %v49_v16 = vld [vmem:[%s533_s5] sm:$0x3] }
  0x2b   :  { %v214_v17 = vrot.slane %v49_v16, %v213_v15  ;;  %v206_v20 = vrot.slane %v49_v16, %v205_v18 }
  0x2c   :  { %337 = vmatmul.mubr.msk.f32.vlgmr.msra.gmra.mrb[0].mxu0 %vm56_vm1, %v53_v8  ;;  %344 = vmatmul.mubr.msk.f32.vlgmr.msra.gmra.mrb[0].mxu1 %vm56_vm1, %v50_v9 }
  0x2d   :  { %350 = vmatprep.mubr.msk.f32.mxu0 %vm430_vm0, %v431_v1  ;;  %362 = vmatpush3.bf16.msk.msra.mxu0 %vm361_vm4, %v360_v13 }
  0xff   :  { %v126_v19 = vpop.f32.mrb[0].mxu0  ;;  %v199_v21 = vpop.f32.mrb[0].mxu1 }
 0x100   :  { %v338_v22 = vpop.f32.mrb[1].mxu0  ;;  %v200_v23 = vadd.f32 %v199_v21, %v126_v19  ;;  %v345_v24 = vpop.f32.mrb[1].mxu1 }
 0x102   :  { %v207_v25 = vadd.f32 %v206_v20, %v200_v23 }
 0x104   :  { %v208_v26 = vmax.f32 %v207_v25, 0.0 }
 0x106   :  { %351 = vmatmul.mubr.msk.f32.vlgmr.msra.gmra.mrb[2].mxu0 %vm215_vm5, %v208_v26 }
 0x1d9   :  { %v289_v27 = vpop.f32.mrb[2].mxu0 }
 0x1da   :  { %v290_v28 = vadd.f32 %v289_v27, %v214_v17  ;;  %v352_v29 = vpop.f32.mrb[3].mxu0 }
 0x1dc   :  { %294 = vrot.lane.b32.xlu0 %v290_v28, %s433_s4 }
 0x24e   :  { %v295_v30 = vpop.permute.xlu0 %294 }
 0x24f   :  { %v297_v31 = vsub.f32 %v290_v28, %v295_v30 }
 0x251   :  { %v298_v32 = vsub.f32 0.0, %v297_v31 }
 0x253   :  { %v299_v33 = vmul.f32 1.442695, %v298_v32 }
 0x255   :  { %373 = vpow2.f32 %v299_v33 }
 0x25f   :  { %v374_v34 = vpop.eup %373 }
 0x260   :  { %v301_v35 = vadd.f32 1.0, %v374_v34 }
 0x262   :  { %375 = vrcp.f32 %v301_v35 }
 0x26c   :  { %v376_v36 = vpop.eup %375 }
 0x26d   :  { %v306_v37 = vsub.f32 1.0, %v376_v36  ;;  %305 = vst.msk [vmem:[%s534_s6] sm:$0xff] %vm304_vm6, %v376_v36 }
 0x26f   :  { %308 = vrot.lane.b32.xlu0 %v306_v37, %s434_s8 }
 0x2e1   :  { %v309_v38 = vpop.permute.xlu0 %308 }
 0x2e2   :  { %312 = vst.msk [vmem:[%s534_s6] sm:$0xff] %vm311_vm7, %v309_v38 }
 0x2e3   :  { %317 = vsyncpa [#allocation3], 1 }
 0x2e4   :  { %318 = vsyncpa [#allocation5], 1 }

</bundles_post_ra>
